<compile_context>
chip_gen: v7x
topology: tpu7x:2x2x1
jax: 0.10.0
libtpu: 0.0.40
codegen_flags: <defaults>
</compile_context>

<pallas_src>
import jax
import jax.numpy as jnp
import numpy as np
from jax import lax
from jax.experimental import pallas as pl
from jax.experimental.pallas import tpu as pltpu


def _round_up(x, m):
    return (x + m - 1) // m * m


def rnn_recurrence_kernel(pre_ref, h0_ref, wh_ref, h_all_ref, h_scr):
    """One (batch-block, time-chunk) grid step of the recurrence.

    pre_ref  : [Tc, Bblk, Hp] bf16  precomputed  emb@W_e + cnn@W_c + b
    h0_ref   : [Bblk, Hp]     f32   initial hidden state (padded)
    wh_ref   : [Hp, Hp]       bf16  hidden->hidden weight (padded, resident)
    h_all_ref: [Tc, Bblk, Hp] bf16  hidden states of this chunk (output)
    h_scr    : [Bblk, Hp]     f32   hidden-state carry across time chunks
    """
    @pl.when(pl.program_id(1) == 0)
    def _init():
        h_scr[...] = h0_ref[...]

    tc = pre_ref.shape[0]

    def step(t, carry):
        h = h_scr[...]                                      # f32 carry
        hw = jnp.dot(h.astype(jnp.bfloat16), wh_ref[...],
                     preferred_element_type=jnp.float32)    # bf16 MXU, f32 acc
        h_new = jnp.tanh(pre_ref[t].astype(jnp.float32) + hw)
        h_all_ref[t] = h_new.astype(jnp.bfloat16)
        h_scr[...] = h_new
        return carry

    lax.fori_loop(0, tc, step, 0, unroll=min(8, tc))


@jax.jit
def rnn_one_layer_forward(tokens, processed_cnn_features, initial_hidden_state,
                          output_w, output_b, embedding_table, rnn_w, rnn_b):
    """JAX/Pallas equivalent of RNNOneLayerSimplified.forward (is_train=True)."""
    B, T = tokens.shape
    V, H = output_w.shape
    E = embedding_table.shape[1]
    C = processed_cnn_features.shape[1]

    # ---- padded sizes (sublane/lane friendly; 16 rows for bf16 packing) -----
    Bp = _round_up(max(B, 16), 16)
    Hp = _round_up(max(H, 128), 128)

    # ---- time chunking: double-buffered (pre + h_all) chunks <= ~8 MiB ------
    budget = 8 << 20
    tc_fit = max(1, budget // (4 * Bp * Hp * 2))
    Tc = int(min(256, tc_fit, T))
    Tp = _round_up(T, Tc)
    nt = Tp // Tc

    # ---- batch-block split (lets v7x's 2nd TensorCore take half the batch) --
    nb = 2 if (Bp >= 32 and Bp % 32 == 0) else 1
    Bblk = Bp // nb

    # ---- split cell weight by the concat order (emb, cnn, h) ----------------
    w_e = rnn_w[:E]                              # [E, H]
    w_c = rnn_w[E:E + C]                         # [C, H]
    w_h = rnn_w[E + C:]                          # [H, H]
    w_e_p = jnp.zeros((E, Hp), jnp.float32).at[:, :H].set(w_e)
    w_c_p = jnp.zeros((C, Hp), jnp.float32).at[:, :H].set(w_c)
    b_p = jnp.zeros((Hp,), jnp.float32).at[:H].set(rnn_b[0])
    wh_p = (jnp.zeros((Hp, Hp), jnp.float32).at[:H, :H].set(w_h)
            .astype(jnp.bfloat16))

    # ---- hoisted input projection, emitted directly in padded layout --------
    # Pad the cheap operands (tokens, cnn, weight columns) so the einsum
    # produces the padded, time-major [Tp, Bp, Hp] array directly — no big
    # zero-init + copy of `pre`.  Padded H columns stay exactly 0 (so padded h
    # columns stay 0 through tanh(0)=0); padded batch rows / time steps are
    # simply discarded after the kernel.
    tokens_p = jnp.zeros((Bp, Tp), tokens.dtype).at[:B, :T].set(tokens)
    emb_tm = jnp.transpose(embedding_table[tokens_p], (1, 0, 2))   # [Tp,Bp,E]
    cnn_p = jnp.zeros((Bp, C), jnp.float32).at[:B].set(processed_cnn_features)
    cnn_proj = cnn_p @ w_c_p + b_p                                 # [Bp,Hp]
    pre_p = (jnp.einsum("tbe,eh->tbh", emb_tm, w_e_p,
                        preferred_element_type=jnp.float32)
             + cnn_proj[None]).astype(jnp.bfloat16)                # [Tp,Bp,Hp]

    h0_p = (jnp.zeros((Bp, Hp), jnp.float32)
            .at[:B, :H].set(initial_hidden_state[0]))

    # ---- VMEM budget (explicit, generation-aware: <= 48 MiB for v7x) --------
    pre_block_bytes = Tc * Bblk * Hp * 2
    est = 4 * pre_block_bytes            # pre + h_all, 2 buffers each (bf16)
    est += 2 * Bblk * Hp * 4             # h0 (f32)
    est += 2 * Hp * Hp * 2               # W_h (bf16)
    est += Bblk * Hp * 4                 # h carry scratch (f32)
    vmem_limit = int(min(max(2 * est, 8 << 20), 48 << 20))

    # ---- the only serial part: the recurrence, streamed over time chunks ----
    h_all_p = pl.pallas_call(
        rnn_recurrence_kernel,
        out_shape=jax.ShapeDtypeStruct((Tp, Bp, Hp), jnp.bfloat16),
        grid=(nb, nt),
        in_specs=[
            pl.BlockSpec((Tc, Bblk, Hp), lambda b, t: (t, b, 0)),   # pre chunk
            pl.BlockSpec((Bblk, Hp), lambda b, t: (b, 0)),          # h0
            pl.BlockSpec((Hp, Hp), lambda b, t: (0, 0)),            # W_h
        ],
        out_specs=pl.BlockSpec((Tc, Bblk, Hp), lambda b, t: (t, b, 0)),
        scratch_shapes=[pltpu.VMEM((Bblk, Hp), jnp.float32)],
        compiler_params=pltpu.CompilerParams(
            dimension_semantics=("parallel", "arbitrary"),
            vmem_limit_bytes=vmem_limit),
    )(pre_p, h0_p, wh_p)

    h_all = h_all_p[:T, :B, :H]                            # [T,B,H] bf16
    h_final = h_all[T - 1].astype(jnp.float32)             # [B,H]

    # ---- hoisted output projection: one bf16 [T*B,H] @ [H,V] matmul ---------
    logits_tm = (jnp.einsum("tbh,vh->tbv", h_all, output_w.astype(jnp.bfloat16),
                            preferred_element_type=jnp.float32)
                 + output_b)                               # [T,B,V] f32
    logits = jnp.transpose(logits_tm, (1, 0, 2))           # [B,T,V]
    return logits, h_final[None]                           # ([B,T,V], [1,B,H])


def reference_forward(tokens, cnn_feats, h0_3d, output_w, output_b,
                      embedding_table, rnn_w, rnn_b):
    """Plain-JAX f32 reference mirroring the PyTorch module (train mode)."""
    B, T = tokens.shape
    all_emb = embedding_table[tokens]                      # [B,T,E]
    h = h0_3d[0]
    logits_seq = []
    for i in range(T):
        x = jnp.concatenate([all_emb[:, i, :], cnn_feats], axis=1)
        x2 = jnp.concatenate([x, h], axis=1)
        h = jnp.tanh(x2 @ rnn_w + rnn_b)
        logits_seq.append(h @ output_w.T + output_b)
    return jnp.stack(logits_seq, axis=1), h[None]


def _run_case(key, B, T, E, C, H, V):
    input_size = E + C
    k_tok, k_cnn, k_h0, k_emb, k_w, k_ow, k_ob = jax.random.split(key, 7)

    tokens = jax.random.randint(k_tok, (B, T), 0, V, dtype=jnp.int32)
    cnn_feats = jax.random.normal(k_cnn, (B, C), jnp.float32)
    h0 = jax.random.normal(k_h0, (1, B, H), jnp.float32)

    embedding_table = jax.random.normal(k_emb, (V, E), jnp.float32) * 0.1
    rnn_w = jax.random.normal(k_w, (input_size + H, H), jnp.float32) / np.sqrt(
        input_size + H)                                    # variance scaling
    rnn_b = jnp.zeros((1, H), jnp.float32)
    output_w = jax.random.normal(k_ow, (V, H), jnp.float32) / np.sqrt(H)
    output_b = jax.random.normal(k_ob, (V,), jnp.float32) * 0.01

    logits, h_final = rnn_one_layer_forward(
        tokens, cnn_feats, h0, output_w, output_b, embedding_table, rnn_w, rnn_b)
    jax.block_until_ready((logits, h_final))

    ref_logits, ref_h = reference_forward(
        tokens, cnn_feats, h0, output_w, output_b, embedding_table, rnn_w, rnn_b)

    assert logits.shape == (B, T, V) and h_final.shape == (1, B, H)
    # bf16 storage of pre/h_all + bf16 MXU inputs loosen tolerances vs f32 ref.
    np.testing.assert_allclose(np.asarray(logits), np.asarray(ref_logits),
                               rtol=5e-2, atol=5e-2)
    np.testing.assert_allclose(np.asarray(h_final), np.asarray(ref_h),
                               rtol=5e-2, atol=5e-2)


if __name__ == "__main__":
    key = jax.random.PRNGKey(0)
    k1, k2 = jax.random.split(key)
    # Small shapes consistent with the module's forward.
    _run_case(k1, B=2, T=8, E=16, C=16, H=32, V=64)
    # Padding regression: nothing divides the (8,128) / chunk sizes evenly.
    _run_case(k2, B=3, T=5, E=12, C=10, H=40, V=50)
    print("KERNEL_OK")
</pallas_src>

<mosaic_0001>
module attributes {stable_mosaic.version = 11 : i64} {
  func.func @rnn_recurrence_kernel(%arg0: i32, %arg1: i32, %arg2: memref<8x16x128xbf16, #tpu.memory_space<vmem>>, %arg3: memref<16x128xf32, #tpu.memory_space<vmem>>, %arg4: memref<128x128xbf16, #tpu.memory_space<vmem>>, %arg5: memref<8x16x128xbf16, #tpu.memory_space<vmem>>, %arg6: memref<16x128xf32, #tpu.memory_space<vmem>>) attributes {dimension_semantics = [#tpu.dimension_semantics<parallel>, #tpu.dimension_semantics<arbitrary>], iteration_bounds = array<i64: 1, 1>, scalar_prefetch = 0 : i64, scratch_operands = 1 : i64, tpu.core_type = #tpu.core_type<tc>, window_params = [{transform_indices = @transform_0, window_bounds = array<i64: 8, 16, 128>}, {transform_indices = @transform_1, window_bounds = array<i64: 16, 128>}, {pipeline_mode = #tpu.pipeline_mode<synchronous>, transform_indices = @transform_2, window_bounds = array<i64: 128, 128>}, {transform_indices = @transform_3, window_bounds = array<i64: 8, 16, 128>}]} {
    %c0_i32 = arith.constant 0 : i32
    %0 = arith.cmpi eq, %arg1, %c0_i32 : i32
    %1 = arith.extui %0 : i1 to i32
    %c0_i32_0 = arith.constant 0 : i32
    %2 = arith.cmpi ne, %1, %c0_i32_0 : i32
    scf.if %2 {
      %c0_88 = arith.constant 0 : index
      %c0_89 = arith.constant 0 : index
      %131 = vector.load %arg3[%c0_88, %c0_89] : memref<16x128xf32, #tpu.memory_space<vmem>>, vector<16x128xf32>
      %c0_90 = arith.constant 0 : index
      %c0_91 = arith.constant 0 : index
      %132 = vector.load %arg6[%c0_90, %c0_91] : memref<16x128xf32, #tpu.memory_space<vmem>>, vector<16x128xf32>
      tpu.vector_store %arg6[%c0_90, %c0_91], %131 {strides = array<i32>} : memref<16x128xf32, #tpu.memory_space<vmem>>, vector<16x128xf32>,
    } else {
    }
    %c0_i32_1 = arith.constant 0 : i32
    %c0 = arith.constant 0 : index
    %c0_2 = arith.constant 0 : index
    %3 = vector.load %arg6[%c0, %c0_2] : memref<16x128xf32, #tpu.memory_space<vmem>>, vector<16x128xf32>
    %4 = arith.truncf %3 : vector<16x128xf32> to vector<16x128xbf16>
    %c0_3 = arith.constant 0 : index
    %c0_4 = arith.constant 0 : index
    %5 = vector.load %arg4[%c0_3, %c0_4] : memref<128x128xbf16, #tpu.memory_space<vmem>>, vector<128x128xbf16>
    %cst = arith.constant dense<0.000000e+00> : vector<16x128xf32>
    %6 = tpu.matmul %4, %5, %cst {dimension_numbers = #tpu.dot_dimension_numbers<[1], [0], [0], [1], [0, 0, 1, 1], [], []>} : vector<16x128xbf16>, vector<128x128xbf16>, vector<16x128xf32> -> vector<16x128xf32>
    %7 = arith.index_cast %c0_i32_1 : i32 to index
    %c0_5 = arith.constant 0 : index
    %c0_6 = arith.constant 0 : index
    %8 = vector.load %arg2[%7, %c0_5, %c0_6] : memref<8x16x128xbf16, #tpu.memory_space<vmem>>, vector<1x16x128xbf16>
    %9 = vector.shape_cast %8 : vector<1x16x128xbf16> to vector<16x128xbf16>
    %10 = arith.extf %9 : vector<16x128xbf16> to vector<16x128xf32>
    %11 = arith.addf %10, %6 : vector<16x128xf32>
    %12 = math.tanh %11 : vector<16x128xf32>
    %13 = arith.truncf %12 : vector<16x128xf32> to vector<16x128xbf16>
    %14 = arith.index_cast %c0_i32_1 : i32 to index
    %c0_7 = arith.constant 0 : index
    %c0_8 = arith.constant 0 : index
    %15 = vector.load %arg5[%14, %c0_7, %c0_8] : memref<8x16x128xbf16, #tpu.memory_space<vmem>>, vector<1x16x128xbf16>
    %16 = vector.shape_cast %15 : vector<1x16x128xbf16> to vector<16x128xbf16>
    %17 = vector.shape_cast %13 : vector<16x128xbf16> to vector<1x16x128xbf16>
    tpu.vector_store %arg5[%14, %c0_7, %c0_8], %17 {strides = array<i32>} : memref<8x16x128xbf16, #tpu.memory_space<vmem>>, vector<1x16x128xbf16>,
    %c0_9 = arith.constant 0 : index
    %c0_10 = arith.constant 0 : index
    %18 = vector.load %arg6[%c0_9, %c0_10] : memref<16x128xf32, #tpu.memory_space<vmem>>, vector<16x128xf32>
    tpu.vector_store %arg6[%c0_9, %c0_10], %12 {strides = array<i32>} : memref<16x128xf32, #tpu.memory_space<vmem>>, vector<16x128xf32>,
    %c1_i32 = arith.constant 1 : i32
    %c0_11 = arith.constant 0 : index
    %c0_12 = arith.constant 0 : index
    %19 = vector.load %arg6[%c0_11, %c0_12] : memref<16x128xf32, #tpu.memory_space<vmem>>, vector<16x128xf32>
    %20 = arith.truncf %19 : vector<16x128xf32> to vector<16x128xbf16>
    %c0_13 = arith.constant 0 : index
    %c0_14 = arith.constant 0 : index
    %21 = vector.load %arg4[%c0_13, %c0_14] : memref<128x128xbf16, #tpu.memory_space<vmem>>, vector<128x128xbf16>
    %cst_15 = arith.constant dense<0.000000e+00> : vector<16x128xf32>
    %22 = tpu.matmul %20, %21, %cst_15 {dimension_numbers = #tpu.dot_dimension_numbers<[1], [0], [0], [1], [0, 0, 1, 1], [], []>} : vector<16x128xbf16>, vector<128x128xbf16>, vector<16x128xf32> -> vector<16x128xf32>
    %23 = arith.index_cast %c1_i32 : i32 to index
    %c0_16 = arith.constant 0 : index
    %c0_17 = arith.constant 0 : index
    %24 = vector.load %arg2[%23, %c0_16, %c0_17] : memref<8x16x128xbf16, #tpu.memory_space<vmem>>, vector<1x16x128xbf16>
    %25 = vector.shape_cast %24 : vector<1x16x128xbf16> to vector<16x128xbf16>
    %26 = arith.extf %25 : vector<16x128xbf16> to vector<16x128xf32>
    %27 = arith.addf %26, %22 : vector<16x128xf32>
    %28 = math.tanh %27 : vector<16x128xf32>
    %29 = arith.truncf %28 : vector<16x128xf32> to vector<16x128xbf16>
    %30 = arith.index_cast %c1_i32 : i32 to index
    %c0_18 = arith.constant 0 : index
    %c0_19 = arith.constant 0 : index
    %31 = vector.load %arg5[%30, %c0_18, %c0_19] : memref<8x16x128xbf16, #tpu.memory_space<vmem>>, vector<1x16x128xbf16>
    %32 = vector.shape_cast %31 : vector<1x16x128xbf16> to vector<16x128xbf16>
    %33 = vector.shape_cast %29 : vector<16x128xbf16> to vector<1x16x128xbf16>
    tpu.vector_store %arg5[%30, %c0_18, %c0_19], %33 {strides = array<i32>} : memref<8x16x128xbf16, #tpu.memory_space<vmem>>, vector<1x16x128xbf16>,
    %c0_20 = arith.constant 0 : index
    %c0_21 = arith.constant 0 : index
    %34 = vector.load %arg6[%c0_20, %c0_21] : memref<16x128xf32, #tpu.memory_space<vmem>>, vector<16x128xf32>
    tpu.vector_store %arg6[%c0_20, %c0_21], %28 {strides = array<i32>} : memref<16x128xf32, #tpu.memory_space<vmem>>, vector<16x128xf32>,
    %c2_i32 = arith.constant 2 : i32
    %c0_22 = arith.constant 0 : index
    %c0_23 = arith.constant 0 : index
    %35 = vector.load %arg6[%c0_22, %c0_23] : memref<16x128xf32, #tpu.memory_space<vmem>>, vector<16x128xf32>
    %36 = arith.truncf %35 : vector<16x128xf32> to vector<16x128xbf16>
    %c0_24 = arith.constant 0 : index
    %c0_25 = arith.constant 0 : index
    %37 = vector.load %arg4[%c0_24, %c0_25] : memref<128x128xbf16, #tpu.memory_space<vmem>>, vector<128x128xbf16>
    %cst_26 = arith.constant dense<0.000000e+00> : vector<16x128xf32>
    %38 = tpu.matmul %36, %37, %cst_26 {dimension_numbers = #tpu.dot_dimension_numbers<[1], [0], [0], [1], [0, 0, 1, 1], [], []>} : vector<16x128xbf16>, vector<128x128xbf16>, vector<16x128xf32> -> vector<16x128xf32>
    %39 = arith.index_cast %c2_i32 : i32 to index
    %c0_27 = arith.constant 0 : index
    %c0_28 = arith.constant 0 : index
    %40 = vector.load %arg2[%39, %c0_27, %c0_28] : memref<8x16x128xbf16, #tpu.memory_space<vmem>>, vector<1x16x128xbf16>
    %41 = vector.shape_cast %40 : vector<1x16x128xbf16> to vector<16x128xbf16>
    %42 = arith.extf %41 : vector<16x128xbf16> to vector<16x128xf32>
    %43 = arith.addf %42, %38 : vector<16x128xf32>
    %44 = math.tanh %43 : vector<16x128xf32>
    %45 = arith.truncf %44 : vector<16x128xf32> to vector<16x128xbf16>
    %46 = arith.index_cast %c2_i32 : i32 to index
    %c0_29 = arith.constant 0 : index
    %c0_30 = arith.constant 0 : index
    %47 = vector.load %arg5[%46, %c0_29, %c0_30] : memref<8x16x128xbf16, #tpu.memory_space<vmem>>, vector<1x16x128xbf16>
    %48 = vector.shape_cast %47 : vector<1x16x128xbf16> to vector<16x128xbf16>
    %49 = vector.shape_cast %45 : vector<16x128xbf16> to vector<1x16x128xbf16>
    tpu.vector_store %arg5[%46, %c0_29, %c0_30], %49 {strides = array<i32>} : memref<8x16x128xbf16, #tpu.memory_space<vmem>>, vector<1x16x128xbf16>,
    %c0_31 = arith.constant 0 : index
    %c0_32 = arith.constant 0 : index
    %50 = vector.load %arg6[%c0_31, %c0_32] : memref<16x128xf32, #tpu.memory_space<vmem>>, vector<16x128xf32>
    tpu.vector_store %arg6[%c0_31, %c0_32], %44 {strides = array<i32>} : memref<16x128xf32, #tpu.memory_space<vmem>>, vector<16x128xf32>,
    %c3_i32 = arith.constant 3 : i32
    %c0_33 = arith.constant 0 : index
    %c0_34 = arith.constant 0 : index
    %51 = vector.load %arg6[%c0_33, %c0_34] : memref<16x128xf32, #tpu.memory_space<vmem>>, vector<16x128xf32>
    %52 = arith.truncf %51 : vector<16x128xf32> to vector<16x128xbf16>
    %c0_35 = arith.constant 0 : index
    %c0_36 = arith.constant 0 : index
    %53 = vector.load %arg4[%c0_35, %c0_36] : memref<128x128xbf16, #tpu.memory_space<vmem>>, vector<128x128xbf16>
    %cst_37 = arith.constant dense<0.000000e+00> : vector<16x128xf32>
    %54 = tpu.matmul %52, %53, %cst_37 {dimension_numbers = #tpu.dot_dimension_numbers<[1], [0], [0], [1], [0, 0, 1, 1], [], []>} : vector<16x128xbf16>, vector<128x128xbf16>, vector<16x128xf32> -> vector<16x128xf32>
    %55 = arith.index_cast %c3_i32 : i32 to index
    %c0_38 = arith.constant 0 : index
    %c0_39 = arith.constant 0 : index
    %56 = vector.load %arg2[%55, %c0_38, %c0_39] : memref<8x16x128xbf16, #tpu.memory_space<vmem>>, vector<1x16x128xbf16>
    %57 = vector.shape_cast %56 : vector<1x16x128xbf16> to vector<16x128xbf16>
    %58 = arith.extf %57 : vector<16x128xbf16> to vector<16x128xf32>
    %59 = arith.addf %58, %54 : vector<16x128xf32>
    %60 = math.tanh %59 : vector<16x128xf32>
    %61 = arith.truncf %60 : vector<16x128xf32> to vector<16x128xbf16>
    %62 = arith.index_cast %c3_i32 : i32 to index
    %c0_40 = arith.constant 0 : index
    %c0_41 = arith.constant 0 : index
    %63 = vector.load %arg5[%62, %c0_40, %c0_41] : memref<8x16x128xbf16, #tpu.memory_space<vmem>>, vector<1x16x128xbf16>
    %64 = vector.shape_cast %63 : vector<1x16x128xbf16> to vector<16x128xbf16>
    %65 = vector.shape_cast %61 : vector<16x128xbf16> to vector<1x16x128xbf16>
    tpu.vector_store %arg5[%62, %c0_40, %c0_41], %65 {strides = array<i32>} : memref<8x16x128xbf16, #tpu.memory_space<vmem>>, vector<1x16x128xbf16>,
    %c0_42 = arith.constant 0 : index
    %c0_43 = arith.constant 0 : index
    %66 = vector.load %arg6[%c0_42, %c0_43] : memref<16x128xf32, #tpu.memory_space<vmem>>, vector<16x128xf32>
    tpu.vector_store %arg6[%c0_42, %c0_43], %60 {strides = array<i32>} : memref<16x128xf32, #tpu.memory_space<vmem>>, vector<16x128xf32>,
    %c4_i32 = arith.constant 4 : i32
    %c0_44 = arith.constant 0 : index
    %c0_45 = arith.constant 0 : index
    %67 = vector.load %arg6[%c0_44, %c0_45] : memref<16x128xf32, #tpu.memory_space<vmem>>, vector<16x128xf32>
    %68 = arith.truncf %67 : vector<16x128xf32> to vector<16x128xbf16>
    %c0_46 = arith.constant 0 : index
    %c0_47 = arith.constant 0 : index
    %69 = vector.load %arg4[%c0_46, %c0_47] : memref<128x128xbf16, #tpu.memory_space<vmem>>, vector<128x128xbf16>
    %cst_48 = arith.constant dense<0.000000e+00> : vector<16x128xf32>
    %70 = tpu.matmul %68, %69, %cst_48 {dimension_numbers = #tpu.dot_dimension_numbers<[1], [0], [0], [1], [0, 0, 1, 1], [], []>} : vector<16x128xbf16>, vector<128x128xbf16>, vector<16x128xf32> -> vector<16x128xf32>
    %71 = arith.index_cast %c4_i32 : i32 to index
    %c0_49 = arith.constant 0 : index
    %c0_50 = arith.constant 0 : index
    %72 = vector.load %arg2[%71, %c0_49, %c0_50] : memref<8x16x128xbf16, #tpu.memory_space<vmem>>, vector<1x16x128xbf16>
    %73 = vector.shape_cast %72 : vector<1x16x128xbf16> to vector<16x128xbf16>
    %74 = arith.extf %73 : vector<16x128xbf16> to vector<16x128xf32>
    %75 = arith.addf %74, %70 : vector<16x128xf32>
    %76 = math.tanh %75 : vector<16x128xf32>
    %77 = arith.truncf %76 : vector<16x128xf32> to vector<16x128xbf16>
    %78 = arith.index_cast %c4_i32 : i32 to index
    %c0_51 = arith.constant 0 : index
    %c0_52 = arith.constant 0 : index
    %79 = vector.load %arg5[%78, %c0_51, %c0_52] : memref<8x16x128xbf16, #tpu.memory_space<vmem>>, vector<1x16x128xbf16>
    %80 = vector.shape_cast %79 : vector<1x16x128xbf16> to vector<16x128xbf16>
    %81 = vector.shape_cast %77 : vector<16x128xbf16> to vector<1x16x128xbf16>
    tpu.vector_store %arg5[%78, %c0_51, %c0_52], %81 {strides = array<i32>} : memref<8x16x128xbf16, #tpu.memory_space<vmem>>, vector<1x16x128xbf16>,
    %c0_53 = arith.constant 0 : index
    %c0_54 = arith.constant 0 : index
    %82 = vector.load %arg6[%c0_53, %c0_54] : memref<16x128xf32, #tpu.memory_space<vmem>>, vector<16x128xf32>
    tpu.vector_store %arg6[%c0_53, %c0_54], %76 {strides = array<i32>} : memref<16x128xf32, #tpu.memory_space<vmem>>, vector<16x128xf32>,
    %c5_i32 = arith.constant 5 : i32
    %c0_55 = arith.constant 0 : index
    %c0_56 = arith.constant 0 : index
    %83 = vector.load %arg6[%c0_55, %c0_56] : memref<16x128xf32, #tpu.memory_space<vmem>>, vector<16x128xf32>
    %84 = arith.truncf %83 : vector<16x128xf32> to vector<16x128xbf16>
    %c0_57 = arith.constant 0 : index
    %c0_58 = arith.constant 0 : index
    %85 = vector.load %arg4[%c0_57, %c0_58] : memref<128x128xbf16, #tpu.memory_space<vmem>>, vector<128x128xbf16>
    %cst_59 = arith.constant dense<0.000000e+00> : vector<16x128xf32>
    %86 = tpu.matmul %84, %85, %cst_59 {dimension_numbers = #tpu.dot_dimension_numbers<[1], [0], [0], [1], [0, 0, 1, 1], [], []>} : vector<16x128xbf16>, vector<128x128xbf16>, vector<16x128xf32> -> vector<16x128xf32>
    %87 = arith.index_cast %c5_i32 : i32 to index
    %c0_60 = arith.constant 0 : index
    %c0_61 = arith.constant 0 : index
    %88 = vector.load %arg2[%87, %c0_60, %c0_61] : memref<8x16x128xbf16, #tpu.memory_space<vmem>>, vector<1x16x128xbf16>
    %89 = vector.shape_cast %88 : vector<1x16x128xbf16> to vector<16x128xbf16>
    %90 = arith.extf %89 : vector<16x128xbf16> to vector<16x128xf32>
    %91 = arith.addf %90, %86 : vector<16x128xf32>
    %92 = math.tanh %91 : vector<16x128xf32>
    %93 = arith.truncf %92 : vector<16x128xf32> to vector<16x128xbf16>
    %94 = arith.index_cast %c5_i32 : i32 to index
    %c0_62 = arith.constant 0 : index
    %c0_63 = arith.constant 0 : index
    %95 = vector.load %arg5[%94, %c0_62, %c0_63] : memref<8x16x128xbf16, #tpu.memory_space<vmem>>, vector<1x16x128xbf16>
    %96 = vector.shape_cast %95 : vector<1x16x128xbf16> to vector<16x128xbf16>
    %97 = vector.shape_cast %93 : vector<16x128xbf16> to vector<1x16x128xbf16>
    tpu.vector_store %arg5[%94, %c0_62, %c0_63], %97 {strides = array<i32>} : memref<8x16x128xbf16, #tpu.memory_space<vmem>>, vector<1x16x128xbf16>,
    %c0_64 = arith.constant 0 : index
    %c0_65 = arith.constant 0 : index
    %98 = vector.load %arg6[%c0_64, %c0_65] : memref<16x128xf32, #tpu.memory_space<vmem>>, vector<16x128xf32>
    tpu.vector_store %arg6[%c0_64, %c0_65], %92 {strides = array<i32>} : memref<16x128xf32, #tpu.memory_space<vmem>>, vector<16x128xf32>,
    %c6_i32 = arith.constant 6 : i32
    %c0_66 = arith.constant 0 : index
    %c0_67 = arith.constant 0 : index
    %99 = vector.load %arg6[%c0_66, %c0_67] : memref<16x128xf32, #tpu.memory_space<vmem>>, vector<16x128xf32>
    %100 = arith.truncf %99 : vector<16x128xf32> to vector<16x128xbf16>
    %c0_68 = arith.constant 0 : index
    %c0_69 = arith.constant 0 : index
    %101 = vector.load %arg4[%c0_68, %c0_69] : memref<128x128xbf16, #tpu.memory_space<vmem>>, vector<128x128xbf16>
    %cst_70 = arith.constant dense<0.000000e+00> : vector<16x128xf32>
    %102 = tpu.matmul %100, %101, %cst_70 {dimension_numbers = #tpu.dot_dimension_numbers<[1], [0], [0], [1], [0, 0, 1, 1], [], []>} : vector<16x128xbf16>, vector<128x128xbf16>, vector<16x128xf32> -> vector<16x128xf32>
    %103 = arith.index_cast %c6_i32 : i32 to index
    %c0_71 = arith.constant 0 : index
    %c0_72 = arith.constant 0 : index
    %104 = vector.load %arg2[%103, %c0_71, %c0_72] : memref<8x16x128xbf16, #tpu.memory_space<vmem>>, vector<1x16x128xbf16>
    %105 = vector.shape_cast %104 : vector<1x16x128xbf16> to vector<16x128xbf16>
    %106 = arith.extf %105 : vector<16x128xbf16> to vector<16x128xf32>
    %107 = arith.addf %106, %102 : vector<16x128xf32>
    %108 = math.tanh %107 : vector<16x128xf32>
    %109 = arith.truncf %108 : vector<16x128xf32> to vector<16x128xbf16>
    %110 = arith.index_cast %c6_i32 : i32 to index
    %c0_73 = arith.constant 0 : index
    %c0_74 = arith.constant 0 : index
    %111 = vector.load %arg5[%110, %c0_73, %c0_74] : memref<8x16x128xbf16, #tpu.memory_space<vmem>>, vector<1x16x128xbf16>
    %112 = vector.shape_cast %111 : vector<1x16x128xbf16> to vector<16x128xbf16>
    %113 = vector.shape_cast %109 : vector<16x128xbf16> to vector<1x16x128xbf16>
    tpu.vector_store %arg5[%110, %c0_73, %c0_74], %113 {strides = array<i32>} : memref<8x16x128xbf16, #tpu.memory_space<vmem>>, vector<1x16x128xbf16>,
    %c0_75 = arith.constant 0 : index
    %c0_76 = arith.constant 0 : index
    %114 = vector.load %arg6[%c0_75, %c0_76] : memref<16x128xf32, #tpu.memory_space<vmem>>, vector<16x128xf32>
    tpu.vector_store %arg6[%c0_75, %c0_76], %108 {strides = array<i32>} : memref<16x128xf32, #tpu.memory_space<vmem>>, vector<16x128xf32>,
    %c7_i32 = arith.constant 7 : i32
    %c0_77 = arith.constant 0 : index
    %c0_78 = arith.constant 0 : index
    %115 = vector.load %arg6[%c0_77, %c0_78] : memref<16x128xf32, #tpu.memory_space<vmem>>, vector<16x128xf32>
    %116 = arith.truncf %115 : vector<16x128xf32> to vector<16x128xbf16>
    %c0_79 = arith.constant 0 : index
    %c0_80 = arith.constant 0 : index
    %117 = vector.load %arg4[%c0_79, %c0_80] : memref<128x128xbf16, #tpu.memory_space<vmem>>, vector<128x128xbf16>
    %cst_81 = arith.constant dense<0.000000e+00> : vector<16x128xf32>
    %118 = tpu.matmul %116, %117, %cst_81 {dimension_numbers = #tpu.dot_dimension_numbers<[1], [0], [0], [1], [0, 0, 1, 1], [], []>} : vector<16x128xbf16>, vector<128x128xbf16>, vector<16x128xf32> -> vector<16x128xf32>
    %119 = arith.index_cast %c7_i32 : i32 to index
    %c0_82 = arith.constant 0 : index
    %c0_83 = arith.constant 0 : index
    %120 = vector.load %arg2[%119, %c0_82, %c0_83] : memref<8x16x128xbf16, #tpu.memory_space<vmem>>, vector<1x16x128xbf16>
    %121 = vector.shape_cast %120 : vector<1x16x128xbf16> to vector<16x128xbf16>
    %122 = arith.extf %121 : vector<16x128xbf16> to vector<16x128xf32>
    %123 = arith.addf %122, %118 : vector<16x128xf32>
    %124 = math.tanh %123 : vector<16x128xf32>
    %125 = arith.truncf %124 : vector<16x128xf32> to vector<16x128xbf16>
    %126 = arith.index_cast %c7_i32 : i32 to index
    %c0_84 = arith.constant 0 : index
    %c0_85 = arith.constant 0 : index
    %127 = vector.load %arg5[%126, %c0_84, %c0_85] : memref<8x16x128xbf16, #tpu.memory_space<vmem>>, vector<1x16x128xbf16>
    %128 = vector.shape_cast %127 : vector<1x16x128xbf16> to vector<16x128xbf16>
    %129 = vector.shape_cast %125 : vector<16x128xbf16> to vector<1x16x128xbf16>
    tpu.vector_store %arg5[%126, %c0_84, %c0_85], %129 {strides = array<i32>} : memref<8x16x128xbf16, #tpu.memory_space<vmem>>, vector<1x16x128xbf16>,
    %c0_86 = arith.constant 0 : index
    %c0_87 = arith.constant 0 : index
    %130 = vector.load %arg6[%c0_86, %c0_87] : memref<16x128xf32, #tpu.memory_space<vmem>>, vector<16x128xf32>
    tpu.vector_store %arg6[%c0_86, %c0_87], %124 {strides = array<i32>} : memref<16x128xf32, #tpu.memory_space<vmem>>, vector<16x128xf32>,
    %c8_i32 = arith.constant 8 : i32
    return
  }
  func.func @transform_0(%arg0: i32, %arg1: i32) -> (i32, i32, i32) {
    %c0_i32 = arith.constant 0 : i32
    %c0_i32_0 = arith.constant 0 : i32
    return %arg1, %arg0, %c0_i32 : i32, i32, i32
  }
  func.func @transform_1(%arg0: i32, %arg1: i32) -> (i32, i32) {
    %c0_i32 = arith.constant 0 : i32
    %c0_i32_0 = arith.constant 0 : i32
    return %arg0, %c0_i32 : i32, i32
  }
  func.func @transform_2(%arg0: i32, %arg1: i32) -> (i32, i32) {
    %c0_i32 = arith.constant 0 : i32
    %c0_i32_0 = arith.constant 0 : i32
    %c0_i32_1 = arith.constant 0 : i32
    return %c0_i32, %c0_i32_0 : i32, i32
  }
  func.func @transform_3(%arg0: i32, %arg1: i32) -> (i32, i32, i32) {
    %c0_i32 = arith.constant 0 : i32
    %c0_i32_0 = arith.constant 0 : i32
    return %arg1, %arg0, %c0_i32 : i32, i32, i32
  }
}

</mosaic_0001>

<bundles_post_ra>
// kernel: rnn_one_layer_forward.1
= control target key start
LH: loop header
LB: loop body
LE: loop exit
PB: predicated region body
PF: predicated region fallthrough
CT: control target
= control target key end

     0   :  { %v1605_v0 = vmov 0.0   ;;  %vm1606_vm0 = vmmov 0   ;;  %s1953_s2 = inlined_call_operand.vmem [shape: bf16[128,128], index: 2, kind: input, shape index: {}]   ;;  %s1954_s1 = inlined_call_operand.vmem [shape: f32[16,128], index: 1, kind: input, shape index: {}]   ;;  %s1955_s0 = inlined_call_operand.vmem [shape: bf16[8,16,128], index: 0, kind: input, shape index: {}]   ;;  %s1956_s3 = inlined_call_operand.vmem [shape: bf16[8,16,128], index: 3, kind: output, shape index: {}]  }
   0x1   :  { %1347 = vmatprep.subr.bf16.mxu0 %v1605_v0  ;;  %v1509_v1 = vld [vmem:[%s1953_s2] sm:$0xff]   ;;  %1363 = vmatprep.mubr.msk.bf16.mxu0 %vm1606_vm0, %v1605_v0  ;;  %v1510_v2 = vld [vmem:[%s1953_s2 + $0x8] sm:$0xff]   ;;  %v1511_v3 = vld [vmem:[%s1953_s2 + $0x10] sm:$0xff]  }
   0x2   :  { %1367 = vmatprep.subr.bf16.mxu1 %v1605_v0  ;;  %1383 = vmatprep.mubr.msk.bf16.mxu1 %vm1606_vm0, %v1605_v0  ;;  %v1517_v4 = vld [vmem:[%s1953_s2] sm:$0xff]   ;;  %v1512_v5 = vld [vmem:[%s1953_s2 + $0x18] sm:$0xff]   ;;  %v1518_v6 = vld [vmem:[%s1953_s2 + $0x8] sm:$0xff]  }
   0x3   :  { %1348 = vmatpush3.bf16.msra.mxu0 %v1509_v1  ;;  %1368 = vmatpush3.bf16.msra.mxu1 %v1517_v4  ;;  %v1513_v7 = vld [vmem:[%s1953_s2 + $0x20] sm:$0xff]   ;;  %v1519_v8 = vld [vmem:[%s1953_s2 + $0x10] sm:$0xff]   ;;  %v1514_v9 = vld [vmem:[%s1953_s2 + $0x28] sm:$0xff]  }
   0x4   :  { %1349 = vmatprep.subr.bf16.mxu0 %v1605_v0  ;;  %1369 = vmatprep.subr.bf16.mxu1 %v1605_v0  ;;  %v1520_v10 = vld [vmem:[%s1953_s2 + $0x18] sm:$0xff]   ;;  %v1515_v11 = vld [vmem:[%s1953_s2 + $0x30] sm:$0xff]   ;;  %v19_v13 = vld [vmem:[%s1954_s1] sm:$0xff] }
   0x5   :  { %v1516_v12 = vld [vmem:[%s1953_s2 + $0x38] sm:$0xff]   ;;  %v20_v14 = vld [vmem:[%s1954_s1 + $0x8] sm:$0xff]  ;;  %v1521_v16 = vld [vmem:[%s1953_s2 + $0x20] sm:$0xff]  }
   0x6   :  { %v25_v15 = vpack.c.bf16 %v20_v14, %v19_v13  ;;  %v1522_v17 = vld [vmem:[%s1953_s2 + $0x28] sm:$0xff]   ;;  %v1523_v18 = vld [vmem:[%s1953_s2 + $0x30] sm:$0xff]   ;;  %v1524_v19 = vld [vmem:[%s1953_s2 + $0x38] sm:$0xff]  }
   0x7   :  { %1350 = vmatpush3.bf16.msra.mxu0 %v1510_v2  ;;  %1370 = vmatpush3.bf16.msra.mxu1 %v1518_v6  ;;  %v1525_v20 = vld [vmem:[%s1953_s2] sm:$0xff]   ;;  %v1526_v21 = vld [vmem:[%s1953_s2 + $0x8] sm:$0xff]   ;;  %v1527_v22 = vld [vmem:[%s1953_s2 + $0x10] sm:$0xff]  }
   0x8   :  { %1351 = vmatprep.subr.bf16.mxu0 %v1605_v0  ;;  %1371 = vmatprep.subr.bf16.mxu1 %v1605_v0  ;;  %v1528_v23 = vld [vmem:[%s1953_s2 + $0x18] sm:$0xff]   ;;  %v1190_v24 = vld [vmem:[%s1955_s0] sm:$0xff]   ;;  %v1530_v37 = vld [vmem:[%s1953_s2 + $0x28] sm:$0xff]  }
   0x9   :  { %v1191_v25 = vunpack.c.l.bf16 %v1190_v24  ;;  %v1192_v26 = vunpack.c.h.bf16 %v1190_v24  ;;  %v1529_v36 = vld [vmem:[%s1953_s2 + $0x20] sm:$0xff]   ;;  %v1531_v38 = vld [vmem:[%s1953_s2 + $0x30] sm:$0xff]   ;;  %v1532_v39 = vld [vmem:[%s1953_s2 + $0x38] sm:$0xff]  }
   0xa   :  { %v1533_v40 = vld [vmem:[%s1953_s2] sm:$0xff]   ;;  %v1534_v41 = vld [vmem:[%s1953_s2 + $0x8] sm:$0xff]   ;;  %v1535_v42 = vld [vmem:[%s1953_s2 + $0x10] sm:$0xff]  }
   0xb   :  { %1352 = vmatpush3.bf16.msra.mxu0 %v1511_v3  ;;  %1372 = vmatpush3.bf16.msra.mxu1 %v1519_v8  ;;  %v1536_v43 = vld [vmem:[%s1953_s2 + $0x18] sm:$0xff]   ;;  %v1261_v44 = vld [vmem:[%s1955_s0 + $0x8] sm:$0xff]   ;;  %v1537_v56 = vld [vmem:[%s1953_s2 + $0x20] sm:$0xff]  }
   0xc   :  { %1353 = vmatprep.subr.bf16.mxu0 %v1605_v0  ;;  %1373 = vmatprep.subr.bf16.mxu1 %v1605_v0  ;;  %v1200_v45 = vunpack.c.l.bf16 %v1261_v44  ;;  %v1201_v46 = vunpack.c.h.bf16 %v1261_v44  ;;  %v1538_v57 = vld [vmem:[%s1953_s2 + $0x28] sm:$0xff]   ;;  %v1539_v58 = vld [vmem:[%s1953_s2 + $0x30] sm:$0xff]   ;;  %v1540_v59 = vld [vmem:[%s1953_s2 + $0x38] sm:$0xff]  }
   0xd   :  { %v1541_v60 = vld [vmem:[%s1953_s2] sm:$0xff]   ;;  %v1542_v61 = vld [vmem:[%s1953_s2 + $0x8] sm:$0xff]   ;;  %v1543_v62 = vld [vmem:[%s1953_s2 + $0x10] sm:$0xff]  }
   0xe   :  { %v1544_v63 = vld [vmem:[%s1953_s2 + $0x18] sm:$0xff]   ;;  %v1263_v1 = vld [vmem:[%s1955_s0 + $0x10] sm:$0xff]   ;;  %v1545_v13 = vld [vmem:[%s1953_s2 + $0x20] sm:$0xff]  }
   0xf   :  { %1354 = vmatpush3.bf16.msra.mxu0 %v1512_v5  ;;  %1374 = vmatpush3.bf16.msra.mxu1 %v1520_v10  ;;  %v1209_v2 = vunpack.c.l.bf16 %v1263_v1  ;;  %v1210_v3 = vunpack.c.h.bf16 %v1263_v1  ;;  %v1546_v14 = vld [vmem:[%s1953_s2 + $0x28] sm:$0xff]  }
  0x10   :  { %1355 = vmatprep.subr.bf16.mxu0 %v1605_v0  ;;  %1375 = vmatprep.subr.bf16.mxu1 %v1605_v0 }
  0x13   :  { %1356 = vmatpush3.bf16.msra.mxu0 %v1513_v7  ;;  %1376 = vmatpush3.bf16.msra.mxu1 %v1521_v16  ;;  %v1548_v16 = vld [vmem:[%s1953_s2 + $0x38] sm:$0xff]  }
  0x14   :  { %1357 = vmatprep.subr.bf16.mxu0 %v1605_v0  ;;  %1377 = vmatprep.subr.bf16.mxu1 %v1605_v0 }
  0x17   :  { %1358 = vmatpush3.bf16.msra.mxu0 %v1514_v9  ;;  %1378 = vmatpush3.bf16.msra.mxu1 %v1522_v17  ;;  %v1549_v17 = vld [vmem:[%s1953_s2] sm:$0xff]  }
  0x18   :  { %1359 = vmatprep.subr.bf16.mxu0 %v1605_v0  ;;  %1379 = vmatprep.subr.bf16.mxu1 %v1605_v0 }
  0x1b   :  { %1360 = vmatpush3.bf16.msra.mxu0 %v1515_v11  ;;  %1380 = vmatpush3.bf16.msra.mxu1 %v1523_v18  ;;  %v1550_v18 = vld [vmem:[%s1953_s2 + $0x8] sm:$0xff]  }
  0x1c   :  { %1361 = vmatprep.subr.bf16.mxu0 %v1605_v0  ;;  %1381 = vmatprep.subr.bf16.mxu1 %v1605_v0 }
  0x1f   :  { %1362 = vmatpush3.bf16.msra.mxu0 %v1516_v12  ;;  %1382 = vmatpush3.bf16.msra.mxu1 %v1524_v19  ;;  %v1551_v19 = vld [vmem:[%s1953_s2 + $0x10] sm:$0xff]  }
  0x20   :  { %1387 = vmatprep.subr.bf16.mxu0 %v1605_v0  ;;  %1407 = vmatprep.subr.bf16.mxu1 %v1605_v0 }
  0x22   :  { %1364 = vmatmul.mubr.bf16.vlgmr.msra.gmra.mrb[0].mxu0 %v25_v15  ;;  %v1547_v15 = vld [vmem:[%s1953_s2 + $0x30] sm:$0xff]  }
  0x23   :  { %1403 = vmatprep.mubr.msk.bf16.mxu0 %vm1606_vm0, %v1605_v0  ;;  %1388 = vmatpush3.bf16.msra.mxu0 %v1525_v20  ;;  %v1552_v20 = vld [vmem:[%s1953_s2 + $0x18] sm:$0xff]  }
  0x24   :  { %1389 = vmatprep.subr.bf16.mxu0 %v1605_v0 }
  0x27   :  { %1390 = vmatpush3.bf16.msra.mxu0 %v1526_v21  ;;  %v1265_v21 = vld [vmem:[%s1955_s0 + $0x18] sm:$0xff]  }
  0x28   :  { %1391 = vmatprep.subr.bf16.mxu0 %v1605_v0 }
  0x2b   :  { %1392 = vmatpush3.bf16.msra.mxu0 %v1527_v22  ;;  %v1218_v22 = vunpack.c.l.bf16 %v1265_v21 }
  0x2c   :  { %1393 = vmatprep.subr.bf16.mxu0 %v1605_v0 }
  0x2f   :  { %1394 = vmatpush3.bf16.msra.mxu0 %v1528_v23  ;;  %v1219_v23 = vunpack.c.h.bf16 %v1265_v21 }
  0x30   :  { %1395 = vmatprep.subr.bf16.mxu0 %v1605_v0 }
  0x33   :  { %1396 = vmatpush3.bf16.msra.mxu0 %v1529_v36  ;;  %v1556_v36 = vld [vmem:[%s1953_s2 + $0x38] sm:$0xff]  }
  0x34   :  { %1397 = vmatprep.subr.bf16.mxu0 %v1605_v0 }
  0x37   :  { %1398 = vmatpush3.bf16.msra.mxu0 %v1530_v37  ;;  %v1557_v37 = vld [vmem:[%s1953_s2] sm:$0xff]  }
  0x38   :  { %1399 = vmatprep.subr.bf16.mxu0 %v1605_v0 }
  0x3b   :  { %1400 = vmatpush3.bf16.msra.mxu0 %v1531_v38  ;;  %v1558_v38 = vld [vmem:[%s1953_s2 + $0x8] sm:$0xff]  }
  0x3c   :  { %1401 = vmatprep.subr.bf16.mxu0 %v1605_v0 }
  0x3f   :  { %1402 = vmatpush3.bf16.msra.mxu0 %v1532_v39  ;;  %v1559_v39 = vld [vmem:[%s1953_s2 + $0x10] sm:$0xff]  }
  0x40   :  { %1427 = vmatprep.subr.bf16.mxu0 %v1605_v0 }
  0xf5   :  { %v124_v27 = vpop.f32.mrb[0].mxu0 }
  0xf6   :  { %v135_v28 = vadd.f32 %v1191_v25, %v124_v27  ;;  %v1365_v29 = vpop.f32.mrb[1].mxu0 }
  0xf7   :  { %v127_v30 = vpop.f32.mrb[2].mxu0 }
  0xf8   :  { %v136_v31 = vadd.f32 %v1192_v26, %v127_v30  ;;  %v1366_v32 = vpop.f32.mrb[3].mxu0  ;;  %1573 = vtanh.f32 %v135_v28 }
  0xfa   :  { %1575 = vtanh.f32 %v136_v31 }
 0x102   :  { %v1574_v33 = vpop.eup %1573 }
 0x104   :  { %v1576_v34 = vpop.eup %1575 }
 0x105   :  { %v1196_v35 = vpack.c.bf16 %v1576_v34, %v1574_v33  ;;  %v1553_v33 = vld [vmem:[%s1953_s2 + $0x20] sm:$0xff]   ;;  %v1554_v34 = vld [vmem:[%s1953_s2 + $0x28] sm:$0xff]  }
 0x107   :  { %1197 = vst [vmem:[%s1956_s3] sm:$0xff] %v1196_v35   ;;  %1384 = vmatmul.mubr.bf16.vlgmr.msra.gmra.mrb[0].mxu1 %v1196_v35  ;;  %v1555_v35 = vld [vmem:[%s1953_s2 + $0x30] sm:$0xff]  }
 0x108   :  { %1423 = vmatprep.mubr.msk.bf16.mxu1 %vm1606_vm0, %v1605_v0  ;;  %1408 = vmatpush3.bf16.msra.mxu1 %v1533_v40  ;;  %v1560_v40 = vld [vmem:[%s1953_s2 + $0x18] sm:$0xff]  }
 0x109   :  { %1409 = vmatprep.subr.bf16.mxu1 %v1605_v0 }
 0x10c   :  { %1410 = vmatpush3.bf16.msra.mxu1 %v1534_v41  ;;  %v1267_v41 = vld [vmem:[%s1955_s0 + $0x20] sm:$0xff]  }
 0x10d   :  { %1411 = vmatprep.subr.bf16.mxu1 %v1605_v0 }
 0x110   :  { %1412 = vmatpush3.bf16.msra.mxu1 %v1535_v42  ;;  %v1227_v42 = vunpack.c.l.bf16 %v1267_v41 }
 0x111   :  { %1413 = vmatprep.subr.bf16.mxu1 %v1605_v0 }
 0x114   :  { %1414 = vmatpush3.bf16.msra.mxu1 %v1536_v43  ;;  %v1228_v43 = vunpack.c.h.bf16 %v1267_v41 }
 0x115   :  { %1415 = vmatprep.subr.bf16.mxu1 %v1605_v0 }
 0x118   :  { %1416 = vmatpush3.bf16.msra.mxu1 %v1537_v56  ;;  %v1564_v56 = vld [vmem:[%s1953_s2 + $0x38] sm:$0xff]  }
 0x119   :  { %1417 = vmatprep.subr.bf16.mxu1 %v1605_v0 }
 0x11c   :  { %1418 = vmatpush3.bf16.msra.mxu1 %v1538_v57  ;;  %v1565_v57 = vld [vmem:[%s1953_s2] sm:$0xff]  }
 0x11d   :  { %1419 = vmatprep.subr.bf16.mxu1 %v1605_v0 }
 0x120   :  { %1420 = vmatpush3.bf16.msra.mxu1 %v1539_v58  ;;  %v1566_v58 = vld [vmem:[%s1953_s2 + $0x8] sm:$0xff]  }
 0x121   :  { %1421 = vmatprep.subr.bf16.mxu1 %v1605_v0 }
 0x124   :  { %1422 = vmatpush3.bf16.msra.mxu1 %v1540_v59  ;;  %v1567_v59 = vld [vmem:[%s1953_s2 + $0x10] sm:$0xff]  }
 0x125   :  { %1447 = vmatprep.subr.bf16.mxu1 %v1605_v0 }
 0x1da   :  { %v252_v47 = vpop.f32.mrb[0].mxu1 }
 0x1db   :  { %v264_v48 = vadd.f32 %v1200_v45, %v252_v47  ;;  %v1385_v49 = vpop.f32.mrb[1].mxu1 }
 0x1dc   :  { %v255_v50 = vpop.f32.mrb[2].mxu1 }
 0x1dd   :  { %v265_v51 = vadd.f32 %v1201_v46, %v255_v50  ;;  %v1386_v52 = vpop.f32.mrb[3].mxu1  ;;  %1577 = vtanh.f32 %v264_v48 }
 0x1df   :  { %1579 = vtanh.f32 %v265_v51 }
 0x1e7   :  { %v1578_v53 = vpop.eup %1577 }
 0x1e9   :  { %v1580_v54 = vpop.eup %1579 }
 0x1ea   :  { %v1205_v55 = vpack.c.bf16 %v1580_v54, %v1578_v53  ;;  %v1561_v53 = vld [vmem:[%s1953_s2 + $0x20] sm:$0xff]   ;;  %v1562_v54 = vld [vmem:[%s1953_s2 + $0x28] sm:$0xff]  }
 0x1ec   :  { %1262 = vst [vmem:[%s1956_s3 + $0x8] sm:$0xff] %v1205_v55   ;;  %1404 = vmatmul.mubr.bf16.vlgmr.msra.gmra.mrb[4].mxu0 %v1205_v55  ;;  %v1563_v55 = vld [vmem:[%s1953_s2 + $0x30] sm:$0xff]  }
 0x1ed   :  { %1443 = vmatprep.mubr.msk.bf16.mxu0 %vm1606_vm0, %v1605_v0  ;;  %1428 = vmatpush3.bf16.msra.mxu0 %v1541_v60  ;;  %v1568_v60 = vld [vmem:[%s1953_s2 + $0x18] sm:$0xff]  }
 0x1ee   :  { %1429 = vmatprep.subr.bf16.mxu0 %v1605_v0 }
 0x1f1   :  { %1430 = vmatpush3.bf16.msra.mxu0 %v1542_v61  ;;  %v1269_v61 = vld [vmem:[%s1955_s0 + $0x28] sm:$0xff]  }
 0x1f2   :  { %1431 = vmatprep.subr.bf16.mxu0 %v1605_v0 }
 0x1f5   :  { %1432 = vmatpush3.bf16.msra.mxu0 %v1543_v62  ;;  %v1236_v62 = vunpack.c.l.bf16 %v1269_v61 }
 0x1f6   :  { %1433 = vmatprep.subr.bf16.mxu0 %v1605_v0 }
 0x1f9   :  { %1434 = vmatpush3.bf16.msra.mxu0 %v1544_v63  ;;  %v1237_v63 = vunpack.c.h.bf16 %v1269_v61 }
 0x1fa   :  { %1435 = vmatprep.subr.bf16.mxu0 %v1605_v0 }
 0x1fd   :  { %1436 = vmatpush3.bf16.msra.mxu0 %v1545_v13  ;;  %v1572_v13 = vld [vmem:[%s1953_s2 + $0x38] sm:$0xff]  }
 0x1fe   :  { %1437 = vmatprep.subr.bf16.mxu0 %v1605_v0 }
 0x201   :  { %1438 = vmatpush3.bf16.msra.mxu0 %v1546_v14  ;;  %v1271_v14 = vld [vmem:[%s1955_s0 + $0x30] sm:$0xff]  }
 0x202   :  { %1439 = vmatprep.subr.bf16.mxu0 %v1605_v0 }
 0x205   :  { %1440 = vmatpush3.bf16.msra.mxu0 %v1547_v15  ;;  %v1245_v15 = vunpack.c.l.bf16 %v1271_v14 }
 0x206   :  { %1441 = vmatprep.subr.bf16.mxu0 %v1605_v0 }
 0x209   :  { %1442 = vmatpush3.bf16.msra.mxu0 %v1548_v16  ;;  %v1246_v16 = vunpack.c.h.bf16 %v1271_v14 }
 0x20a   :  { %1467 = vmatprep.subr.bf16.mxu0 %v1605_v0 }
 0x2bf   :  { %v382_v4 = vpop.f32.mrb[4].mxu0 }
 0x2c0   :  { %v394_v5 = vadd.f32 %v1209_v2, %v382_v4  ;;  %v1405_v6 = vpop.f32.mrb[5].mxu0 }
 0x2c1   :  { %v385_v7 = vpop.f32.mrb[6].mxu0 }
 0x2c2   :  { %v395_v8 = vadd.f32 %v1210_v3, %v385_v7  ;;  %v1406_v9 = vpop.f32.mrb[7].mxu0  ;;  %1581 = vtanh.f32 %v394_v5 }
 0x2c4   :  { %1583 = vtanh.f32 %v395_v8 }
 0x2cc   :  { %v1582_v10 = vpop.eup %1581 }
 0x2ce   :  { %v1584_v11 = vpop.eup %1583 }
 0x2cf   :  { %v1214_v12 = vpack.c.bf16 %v1584_v11, %v1582_v10  ;;  %v1569_v10 = vld [vmem:[%s1953_s2 + $0x20] sm:$0xff]   ;;  %v1570_v11 = vld [vmem:[%s1953_s2 + $0x28] sm:$0xff]  }
 0x2d1   :  { %1264 = vst [vmem:[%s1956_s3 + $0x10] sm:$0xff] %v1214_v12   ;;  %1424 = vmatmul.mubr.bf16.vlgmr.msra.gmra.mrb[4].mxu1 %v1214_v12  ;;  %v1571_v12 = vld [vmem:[%s1953_s2 + $0x30] sm:$0xff]  }
 0x2d2   :  { %1463 = vmatprep.mubr.msk.bf16.mxu1 %vm1606_vm0, %v1605_v0  ;;  %1448 = vmatpush3.bf16.msra.mxu1 %v1549_v17 }
 0x2d3   :  { %1449 = vmatprep.subr.bf16.mxu1 %v1605_v0 }
 0x2d6   :  { %1450 = vmatpush3.bf16.msra.mxu1 %v1550_v18 }
 0x2d7   :  { %1451 = vmatprep.subr.bf16.mxu1 %v1605_v0 }
 0x2da   :  { %1452 = vmatpush3.bf16.msra.mxu1 %v1551_v19 }
 0x2db   :  { %1453 = vmatprep.subr.bf16.mxu1 %v1605_v0 }
 0x2de   :  { %1454 = vmatpush3.bf16.msra.mxu1 %v1552_v20 }
 0x2df   :  { %1455 = vmatprep.subr.bf16.mxu1 %v1605_v0 }
 0x2e2   :  { %1456 = vmatpush3.bf16.msra.mxu1 %v1553_v33 }
 0x2e3   :  { %1457 = vmatprep.subr.bf16.mxu1 %v1605_v0 }
 0x2e6   :  { %1458 = vmatpush3.bf16.msra.mxu1 %v1554_v34 }
 0x2e7   :  { %1459 = vmatprep.subr.bf16.mxu1 %v1605_v0 }
 0x2ea   :  { %1460 = vmatpush3.bf16.msra.mxu1 %v1555_v35 }
 0x2eb   :  { %1461 = vmatprep.subr.bf16.mxu1 %v1605_v0 }
 0x2ee   :  { %1462 = vmatpush3.bf16.msra.mxu1 %v1556_v36 }
 0x2ef   :  { %1487 = vmatprep.subr.bf16.mxu1 %v1605_v0 }
 0x3a4   :  { %v512_v24 = vpop.f32.mrb[4].mxu1 }
 0x3a5   :  { %v524_v25 = vadd.f32 %v1218_v22, %v512_v24  ;;  %v1425_v26 = vpop.f32.mrb[5].mxu1 }
 0x3a6   :  { %v515_v27 = vpop.f32.mrb[6].mxu1 }
 0x3a7   :  { %v525_v28 = vadd.f32 %v1219_v23, %v515_v27  ;;  %v1426_v29 = vpop.f32.mrb[7].mxu1  ;;  %1585 = vtanh.f32 %v524_v25 }
 0x3a9   :  { %1587 = vtanh.f32 %v525_v28 }
 0x3b1   :  { %v1586_v30 = vpop.eup %1585 }
 0x3b3   :  { %v1588_v31 = vpop.eup %1587 }
 0x3b4   :  { %v1223_v32 = vpack.c.bf16 %v1588_v31, %v1586_v30 }
 0x3b6   :  { %1266 = vst [vmem:[%s1956_s3 + $0x18] sm:$0xff] %v1223_v32   ;;  %1444 = vmatmul.mubr.bf16.vlgmr.msra.gmra.mrb[8].mxu0 %v1223_v32 }
 0x3b7   :  { %1483 = vmatprep.mubr.msk.bf16.mxu0 %vm1606_vm0, %v1605_v0  ;;  %1468 = vmatpush3.bf16.msra.mxu0 %v1557_v37 }
 0x3b8   :  { %1469 = vmatprep.subr.bf16.mxu0 %v1605_v0 }
 0x3bb   :  { %1470 = vmatpush3.bf16.msra.mxu0 %v1558_v38 }
 0x3bc   :  { %1471 = vmatprep.subr.bf16.mxu0 %v1605_v0 }
 0x3bf   :  { %1472 = vmatpush3.bf16.msra.mxu0 %v1559_v39 }
 0x3c0   :  { %1473 = vmatprep.subr.bf16.mxu0 %v1605_v0 }
 0x3c3   :  { %1474 = vmatpush3.bf16.msra.mxu0 %v1560_v40 }
 0x3c4   :  { %1475 = vmatprep.subr.bf16.mxu0 %v1605_v0 }
 0x3c7   :  { %1476 = vmatpush3.bf16.msra.mxu0 %v1561_v53 }
 0x3c8   :  { %1477 = vmatprep.subr.bf16.mxu0 %v1605_v0 }
 0x3cb   :  { %1478 = vmatpush3.bf16.msra.mxu0 %v1562_v54 }
 0x3cc   :  { %1479 = vmatprep.subr.bf16.mxu0 %v1605_v0 }
 0x3cf   :  { %1480 = vmatpush3.bf16.msra.mxu0 %v1563_v55 }
 0x3d0   :  { %1481 = vmatprep.subr.bf16.mxu0 %v1605_v0 }
 0x3d3   :  { %1482 = vmatpush3.bf16.msra.mxu0 %v1564_v56 }
 0x489   :  { %v642_v44 = vpop.f32.mrb[8].mxu0 }
 0x48a   :  { %v654_v45 = vadd.f32 %v1227_v42, %v642_v44  ;;  %v1445_v46 = vpop.f32.mrb[9].mxu0 }
 0x48b   :  { %v645_v47 = vpop.f32.mrb[10].mxu0 }
 0x48c   :  { %v655_v48 = vadd.f32 %v1228_v43, %v645_v47  ;;  %v1446_v49 = vpop.f32.mrb[11].mxu0  ;;  %1589 = vtanh.f32 %v654_v45 }
 0x48e   :  { %1591 = vtanh.f32 %v655_v48 }
 0x496   :  { %v1590_v50 = vpop.eup %1589 }
 0x498   :  { %v1592_v51 = vpop.eup %1591 }
 0x499   :  { %v1232_v52 = vpack.c.bf16 %v1592_v51, %v1590_v50 }
 0x49b   :  { %1268 = vst [vmem:[%s1956_s3 + $0x20] sm:$0xff] %v1232_v52   ;;  %1464 = vmatmul.mubr.bf16.vlgmr.msra.gmra.mrb[8].mxu1 %v1232_v52 }
 0x49c   :  { %1503 = vmatprep.mubr.msk.bf16.mxu1 %vm1606_vm0, %v1605_v0  ;;  %1488 = vmatpush3.bf16.msra.mxu1 %v1565_v57 }
 0x49d   :  { %1489 = vmatprep.subr.bf16.mxu1 %v1605_v0 }
 0x4a0   :  { %1490 = vmatpush3.bf16.msra.mxu1 %v1566_v58 }
 0x4a1   :  { %1491 = vmatprep.subr.bf16.mxu1 %v1605_v0 }
 0x4a4   :  { %1492 = vmatpush3.bf16.msra.mxu1 %v1567_v59 }
 0x4a5   :  { %1493 = vmatprep.subr.bf16.mxu1 %v1605_v0 }
 0x4a8   :  { %1494 = vmatpush3.bf16.msra.mxu1 %v1568_v60 }
 0x4a9   :  { %1495 = vmatprep.subr.bf16.mxu1 %v1605_v0 }
 0x4ac   :  { %1496 = vmatpush3.bf16.msra.mxu1 %v1569_v10 }
 0x4ad   :  { %1497 = vmatprep.subr.bf16.mxu1 %v1605_v0 }
 0x4b0   :  { %1498 = vmatpush3.bf16.msra.mxu1 %v1570_v11 }
 0x4b1   :  { %1499 = vmatprep.subr.bf16.mxu1 %v1605_v0 }
 0x4b4   :  { %1500 = vmatpush3.bf16.msra.mxu1 %v1571_v12 }
 0x4b5   :  { %1501 = vmatprep.subr.bf16.mxu1 %v1605_v0  ;;  %v1273_v0 = vld [vmem:[%s1955_s0 + $0x38] sm:$0xff]  }
 0x4b6   :  { %v1254_v26 = vunpack.c.l.bf16 %v1273_v0  ;;  %v1255_v27 = vunpack.c.h.bf16 %v1273_v0 }
 0x4b8   :  { %1502 = vmatpush3.bf16.msra.mxu1 %v1572_v13 }
 0x56e   :  { %v772_v1 = vpop.f32.mrb[8].mxu1 }
 0x56f   :  { %v784_v2 = vadd.f32 %v1236_v62, %v772_v1  ;;  %v1465_v3 = vpop.f32.mrb[9].mxu1 }
 0x570   :  { %v775_v4 = vpop.f32.mrb[10].mxu1 }
 0x571   :  { %v785_v5 = vadd.f32 %v1237_v63, %v775_v4  ;;  %v1466_v6 = vpop.f32.mrb[11].mxu1  ;;  %1593 = vtanh.f32 %v784_v2 }
 0x573   :  { %1595 = vtanh.f32 %v785_v5 }
 0x57b   :  { %v1594_v7 = vpop.eup %1593 }
 0x57d   :  { %v1596_v8 = vpop.eup %1595 }
 0x57e   :  { %v1241_v9 = vpack.c.bf16 %v1596_v8, %v1594_v7 }
 0x580   :  { %1270 = vst [vmem:[%s1956_s3 + $0x28] sm:$0xff] %v1241_v9   ;;  %1484 = vmatmul.mubr.bf16.vlgmr.msra.gmra.mrb[12].mxu0 %v1241_v9 }
 0x653   :  { %v902_v17 = vpop.f32.mrb[12].mxu0 }
 0x654   :  { %v914_v18 = vadd.f32 %v1245_v15, %v902_v17  ;;  %v1485_v19 = vpop.f32.mrb[13].mxu0 }
 0x655   :  { %v905_v20 = vpop.f32.mrb[14].mxu0 }
 0x656   :  { %v915_v21 = vadd.f32 %v1246_v16, %v905_v20  ;;  %v1486_v22 = vpop.f32.mrb[15].mxu0  ;;  %1597 = vtanh.f32 %v914_v18 }
 0x658   :  { %1599 = vtanh.f32 %v915_v21 }
 0x660   :  { %v1598_v23 = vpop.eup %1597 }
 0x662   :  { %v1600_v24 = vpop.eup %1599 }
 0x663   :  { %v1250_v25 = vpack.c.bf16 %v1600_v24, %v1598_v23 }
 0x665   :  { %1272 = vst [vmem:[%s1956_s3 + $0x30] sm:$0xff] %v1250_v25   ;;  %1504 = vmatmul.mubr.bf16.vlgmr.msra.gmra.mrb[12].mxu1 %v1250_v25 }
 0x738   :  { %v1032_v28 = vpop.f32.mrb[12].mxu1 }
 0x739   :  { %v1044_v29 = vadd.f32 %v1254_v26, %v1032_v28  ;;  %v1505_v30 = vpop.f32.mrb[13].mxu1 }
 0x73a   :  { %v1035_v31 = vpop.f32.mrb[14].mxu1 }
 0x73b   :  { %v1045_v32 = vadd.f32 %v1255_v27, %v1035_v31  ;;  %v1506_v33 = vpop.f32.mrb[15].mxu1  ;;  %1601 = vtanh.f32 %v1044_v29 }
 0x73d   :  { %1603 = vtanh.f32 %v1045_v32 }
 0x745   :  { %v1602_v34 = vpop.eup %1601 }
 0x747   :  { %v1604_v35 = vpop.eup %1603 }
 0x748   :  { %v1259_v36 = vpack.c.bf16 %v1604_v35, %v1602_v34 }
 0x74a   :  { %1274 = vst [vmem:[%s1956_s3 + $0x38] sm:$0xff] %v1259_v36  }

</bundles_post_ra>
